<compile_context>
chip_gen: v7x
topology: tpu7x:2x2x1
jax: 0.10.0
libtpu: 0.0.40
codegen_flags: <defaults>
</compile_context>

<pallas_src>
import jax
import jax.numpy as jnp
from jax.experimental import pallas as pl
from jax.experimental.pallas import tpu as pltpu


# ----------------------------------------------------------------------------
# Parameter packing (done once in the wrapper, outside the kernels)
# ----------------------------------------------------------------------------
def pack_augru_params(w_xh, b_xh, w_hh, b_hh):
    """Pack torch-layout AUGRUCell params into lane-dense MXU-friendly blocks.

    w_xh: (3H, In), b_xh: (3H,)   -- x2h = nn.Linear(input_size, 3H)
    w_hh: (3H, H),  b_hh: (3H,)   -- h2h = nn.Linear(hidden_size, 3H)
    Chunk order matches the module's .chunk(3, 1): [update, reset, new].

    Returns:
      wx_cat: (In, 4H)  columns [u | r | n_x | 0 ]
      wh_cat: (H,  4H)  columns [u | r | 0   | n_h]
      b_cat:  (1,  4H)  = [bx_u + bh_u, bx_r + bh_r, bx_n, bh_n]
    so z = x @ wx_cat + hx @ wh_cat + b_cat gives
      z[:, 0:H]   = i_u + h_u + b_u
      z[:, H:2H]  = i_r + h_r + b_r
      z[:, 2H:3H] = i_n + bx_n
      z[:, 3H:4H] = h_n + bh_n
    """
    three_h, in_size = w_xh.shape
    H = three_h // 3
    wx_u, wx_r, wx_n = w_xh[:H], w_xh[H:2 * H], w_xh[2 * H:]
    wh_u, wh_r, wh_n = w_hh[:H], w_hh[H:2 * H], w_hh[2 * H:]
    bx_u, bx_r, bx_n = b_xh[:H], b_xh[H:2 * H], b_xh[2 * H:]
    bh_u, bh_r, bh_n = b_hh[:H], b_hh[H:2 * H], b_hh[2 * H:]

    zeros_x = jnp.zeros((in_size, H), jnp.float32)
    zeros_h = jnp.zeros((H, H), jnp.float32)
    wx_cat = jnp.concatenate([wx_u.T, wx_r.T, wx_n.T, zeros_x], axis=1
                             ).astype(jnp.float32)                  # (In, 4H)
    wh_cat = jnp.concatenate([wh_u.T, wh_r.T, zeros_h, wh_n.T], axis=1
                             ).astype(jnp.float32)                  # (H, 4H)
    b_cat = jnp.concatenate([bx_u + bh_u, bx_r + bh_r, bx_n, bh_n]
                            ).reshape(1, 4 * H).astype(jnp.float32)  # (1, 4H)
    return wx_cat, wh_cat, b_cat


# ----------------------------------------------------------------------------
# Shared gate math on the packed pre-activations z (B, 4H)
# ----------------------------------------------------------------------------
def _augru_from_z(z, hx, attn):
    H = hx.shape[-1]
    update = jax.nn.sigmoid(z[:, 0:H]) * attn                 # attentional update gate
    reset = jax.nn.sigmoid(z[:, H:2 * H])
    new = jnp.tanh(z[:, 2 * H:3 * H] + reset * z[:, 3 * H:4 * H])
    return hx + update * (new - hx)


# ----------------------------------------------------------------------------
# Single-step kernel (== AUGRUCell.forward(x, hx, attn))
# ----------------------------------------------------------------------------
def _augru_cell_kernel(x_ref, hx_ref, attn_ref, wx_ref, wh_ref, b_ref, out_ref):
    hx = hx_ref[...]                                          # (B, H)
    z = (jnp.dot(x_ref[...], wx_ref[...], preferred_element_type=jnp.float32)
         + jnp.dot(hx, wh_ref[...], preferred_element_type=jnp.float32)
         + b_ref[...])                                        # (B, 4H) lane-dense
    out_ref[...] = _augru_from_z(z, hx, attn_ref[...])


def augru_cell(x, hx, attn, wx_cat, wh_cat, b_cat):
    """Single AUGRU step. x: (B, In), hx: (B, H), attn: (B,)."""
    B, H = hx.shape
    In = x.shape[-1]
    attn2d = attn.reshape(B, 1).astype(jnp.float32)
    vmem = pl.BlockSpec(memory_space=pltpu.MemorySpace.VMEM)
    cost = pl.CostEstimate(
        flops=2 * B * (In + H) * 4 * H + 12 * B * H,
        transcendentals=3 * B * H,
        bytes_accessed=4 * (B * In + B * H + B + (In + H) * 4 * H + 4 * H + B * H),
    )
    return pl.pallas_call(
        _augru_cell_kernel,
        out_shape=jax.ShapeDtypeStruct((B, H), jnp.float32),
        in_specs=[vmem] * 6,
        out_specs=vmem,
        cost_estimate=cost,
    )(x.astype(jnp.float32), hx.astype(jnp.float32), attn2d, wx_cat, wh_cat, b_cat)


# ----------------------------------------------------------------------------
# Phase 1: time-parallel x-projection (one big MXU matmul, biases folded in)
# ----------------------------------------------------------------------------
def _x_proj_kernel(x_ref, wx_ref, b_ref, o_ref):
    o_ref[...] = (jnp.dot(x_ref[...], wx_ref[...],
                          preferred_element_type=jnp.float32) + b_ref[...])


# ----------------------------------------------------------------------------
# Phase 2: fused serial recurrence (whole DIEN time loop in one pallas_call)
# ----------------------------------------------------------------------------
def _augru_seq_kernel(xp_ref, attn_ref, h0_ref, wh_ref, out_ref, h_acc):
    t = pl.program_id(0)

    @pl.when(t == 0)
    def _():
        h_acc[...] = h0_ref[...]                              # init carry once

    hx = h_acc[...]                                           # VMEM-resident carry
    z = xp_ref[0] + jnp.dot(hx, wh_ref[...],
                            preferred_element_type=jnp.float32)   # (B, 4H)
    hy = _augru_from_z(z, hx, attn_ref[0])
    h_acc[...] = hy
    out_ref[0] = hy


def augru_sequence(x_seq, attn_seq, h0, wx_cat, wh_cat, b_cat):
    """Run the AUGRU recurrence over T steps.

    x_seq: (T, B, In), attn_seq: (T, B), h0: (B, H).
    Returns every hidden state, shape (T, B, H); final state is out[-1].
    """
    T, B, In = x_seq.shape
    H = h0.shape[-1]

    # ---- phase 1: gate_x for all timesteps at once (time-parallel) ----------
    vmem = pl.BlockSpec(memory_space=pltpu.MemorySpace.VMEM)
    xp = pl.pallas_call(
        _x_proj_kernel,
        out_shape=jax.ShapeDtypeStruct((T * B, 4 * H), jnp.float32),
        in_specs=[vmem] * 3,
        out_specs=vmem,
        cost_estimate=pl.CostEstimate(
            flops=2 * T * B * In * 4 * H,
            transcendentals=0,
            bytes_accessed=4 * (T * B * In + In * 4 * H + 4 * H + T * B * 4 * H)),
    )(x_seq.reshape(T * B, In).astype(jnp.float32), wx_cat, b_cat)
    xp = xp.reshape(T, B, 4 * H)

    # ---- phase 2: serial recurrence, h carried in VMEM scratch --------------
    attn3d = attn_seq.reshape(T, B, 1).astype(jnp.float32)
    grid_spec = pltpu.PrefetchScalarGridSpec(
        num_scalar_prefetch=0,
        grid=(T,),
        in_specs=[
            pl.BlockSpec((1, B, 4 * H), lambda t: (t, 0, 0)),   # stream gate_x_t
            pl.BlockSpec((1, B, 1), lambda t: (t, 0, 0)),       # stream attn_t
            pl.BlockSpec((B, H), lambda t: (0, 0)),             # h0 (resident)
            pl.BlockSpec((H, 4 * H), lambda t: (0, 0)),         # Wh (resident)
        ],
        out_specs=pl.BlockSpec((1, B, H), lambda t: (t, 0, 0)),
        scratch_shapes=[pltpu.VMEM((B, H), jnp.float32)],       # hidden-state carry
    )
    cost = pl.CostEstimate(
        flops=T * (2 * B * H * 4 * H + 12 * B * H),
        transcendentals=T * 3 * B * H,
        bytes_accessed=4 * (T * B * 4 * H + T * B + B * H + H * 4 * H + T * B * H),
    )
    # TODO(synk): on v7x with large B, add a leading "parallel" batch grid axis
    # so both TensorCores are used; at B=8 a single core is the right choice.
    return pl.pallas_call(
        _augru_seq_kernel,
        out_shape=jax.ShapeDtypeStruct((T, B, H), jnp.float32),
        grid_spec=grid_spec,
        compiler_params=pltpu.CompilerParams(
            dimension_semantics=("arbitrary",)),                # time recurrence
        cost_estimate=cost,
    )(xp, attn3d, h0.astype(jnp.float32), wh_cat)


# ----------------------------------------------------------------------------
# Pure-JAX references (mirror the PyTorch module exactly)
# ----------------------------------------------------------------------------
def reference_augru_step(x, hx, attn, w_xh, b_xh, w_hh, b_hh):
    gate_x = x @ w_xh.T + b_xh
    gate_h = hx @ w_hh.T + b_hh
    H = hx.shape[-1]
    i_u, i_r, i_n = gate_x[:, :H], gate_x[:, H:2 * H], gate_x[:, 2 * H:]
    h_u, h_r, h_n = gate_h[:, :H], gate_h[:, H:2 * H], gate_h[:, 2 * H:]
    update = jax.nn.sigmoid(i_u + h_u) * attn[:, None]
    reset = jax.nn.sigmoid(i_r + h_r)
    new = jnp.tanh(i_n + reset * h_n)
    return hx + update * (new - hx)


def reference_augru_sequence(x_seq, attn_seq, h0, w_xh, b_xh, w_hh, b_hh):
    hs, h = [], h0
    for t in range(x_seq.shape[0]):
        h = reference_augru_step(x_seq[t], h, attn_seq[t], w_xh, b_xh, w_hh, b_hh)
        hs.append(h)
    return jnp.stack(hs, axis=0)


if __name__ == "__main__":
    B, INPUT_SIZE, HIDDEN, T = 8, 16, 32, 8

    key = jax.random.PRNGKey(0)
    kx, kh, ka, kwx, kbx, kwh, kbh = jax.random.split(key, 7)

    x_seq = jax.random.normal(kx, (T, B, INPUT_SIZE), dtype=jnp.float32)
    h0 = jax.random.normal(kh, (B, HIDDEN), dtype=jnp.float32)
    attn_seq = jax.random.uniform(ka, (T, B), dtype=jnp.float32)

    # PyTorch nn.Linear layout: weight (3H, in), bias (3H,); chunk order [u, r, n].
    w_xh = jax.random.normal(kwx, (3 * HIDDEN, INPUT_SIZE), dtype=jnp.float32) * 0.1
    b_xh = jax.random.normal(kbx, (3 * HIDDEN,), dtype=jnp.float32) * 0.1
    w_hh = jax.random.normal(kwh, (3 * HIDDEN, HIDDEN), dtype=jnp.float32) * 0.1
    b_hh = jax.random.normal(kbh, (3 * HIDDEN,), dtype=jnp.float32) * 0.1

    wx_cat, wh_cat, b_cat = pack_augru_params(w_xh, b_xh, w_hh, b_hh)

    # --- single step: the module's forward(x, hx, attn) ----------------------
    out_step = augru_cell(x_seq[0], h0, attn_seq[0], wx_cat, wh_cat, b_cat)
    out_step = jax.block_until_ready(out_step)
    ref_step = reference_augru_step(x_seq[0], h0, attn_seq[0], w_xh, b_xh, w_hh, b_hh)
    assert out_step.shape == (B, HIDDEN)
    assert jnp.allclose(out_step, ref_step, atol=1e-4, rtol=1e-4)

    # --- fused recurrence over T steps (DIEN interest-evolution loop) --------
    out_seq = augru_sequence(x_seq, attn_seq, h0, wx_cat, wh_cat, b_cat)
    out_seq = jax.block_until_ready(out_seq)
    ref_seq = reference_augru_sequence(x_seq, attn_seq, h0, w_xh, b_xh, w_hh, b_hh)
    assert out_seq.shape == (T, B, HIDDEN)
    assert jnp.allclose(out_seq, ref_seq, atol=1e-4, rtol=1e-4)

    print("KERNEL_OK")
</pallas_src>

<mosaic_0001>
module attributes {stable_mosaic.version = 11 : i64} {
  func.func @_augru_cell_kernel(%arg0: memref<8x16xf32, #tpu.memory_space<vmem>>, %arg1: memref<8x32xf32, #tpu.memory_space<vmem>>, %arg2: memref<8x1xf32, #tpu.memory_space<vmem>>, %arg3: memref<16x128xf32, #tpu.memory_space<vmem>>, %arg4: memref<32x128xf32, #tpu.memory_space<vmem>>, %arg5: memref<1x128xf32, #tpu.memory_space<vmem>>, %arg6: memref<8x32xf32, #tpu.memory_space<vmem>>) attributes {dimension_semantics = [], scalar_prefetch = 0 : i64, scratch_operands = 0 : i64, tpu.core_type = #tpu.core_type<tc>} {
    %c0 = arith.constant 0 : index
    %c0_0 = arith.constant 0 : index
    %0 = vector.load %arg1[%c0, %c0_0] : memref<8x32xf32, #tpu.memory_space<vmem>>, vector<8x32xf32>
    %c0_1 = arith.constant 0 : index
    %c0_2 = arith.constant 0 : index
    %1 = vector.load %arg0[%c0_1, %c0_2] : memref<8x16xf32, #tpu.memory_space<vmem>>, vector<8x16xf32>
    %c0_3 = arith.constant 0 : index
    %c0_4 = arith.constant 0 : index
    %2 = vector.load %arg3[%c0_3, %c0_4] : memref<16x128xf32, #tpu.memory_space<vmem>>, vector<16x128xf32>
    %cst = arith.constant dense<0.000000e+00> : vector<8x128xf32>
    %3 = tpu.matmul %1, %2, %cst {dimension_numbers = #tpu.dot_dimension_numbers<[1], [0], [0], [1], [0, 0, 1, 1], [], []>} : vector<8x16xf32>, vector<16x128xf32>, vector<8x128xf32> -> vector<8x128xf32>
    %c0_5 = arith.constant 0 : index
    %c0_6 = arith.constant 0 : index
    %4 = vector.load %arg4[%c0_5, %c0_6] : memref<32x128xf32, #tpu.memory_space<vmem>>, vector<32x128xf32>
    %cst_7 = arith.constant dense<0.000000e+00> : vector<8x128xf32>
    %5 = tpu.matmul %0, %4, %cst_7 {dimension_numbers = #tpu.dot_dimension_numbers<[1], [0], [0], [1], [0, 0, 1, 1], [], []>} : vector<8x32xf32>, vector<32x128xf32>, vector<8x128xf32> -> vector<8x128xf32>
    %6 = arith.addf %3, %5 : vector<8x128xf32>
    %c0_8 = arith.constant 0 : index
    %c0_9 = arith.constant 0 : index
    %7 = vector.load %arg5[%c0_8, %c0_9] : memref<1x128xf32, #tpu.memory_space<vmem>>, vector<1x128xf32>
    %8 = vector.broadcast %7 : vector<1x128xf32> to vector<8x128xf32>
    %9 = arith.addf %6, %8 : vector<8x128xf32>
    %c0_10 = arith.constant 0 : index
    %c0_11 = arith.constant 0 : index
    %10 = vector.load %arg2[%c0_10, %c0_11] : memref<8x1xf32, #tpu.memory_space<vmem>>, vector<8x1xf32>
    %11 = vector.extract_strided_slice %9 {offsets = [0, 0], sizes = [8, 32], strides = [1, 1]} : vector<8x128xf32> to vector<8x32xf32>
    %12 = arith.negf %11 : vector<8x32xf32>
    %13 = math.exp %12 : vector<8x32xf32>
    %cst_12 = arith.constant 1.000000e+00 : f32
    %14 = vector.broadcast %cst_12 : f32 to vector<8x32xf32>
    %15 = arith.addf %14, %13 : vector<8x32xf32>
    %16 = arith.divf %14, %15 : vector<8x32xf32>
    %17 = vector.broadcast %10 : vector<8x1xf32> to vector<8x32xf32>
    %18 = arith.mulf %16, %17 : vector<8x32xf32>
    %19 = vector.extract_strided_slice %9 {offsets = [0, 32], sizes = [8, 32], strides = [1, 1]} : vector<8x128xf32> to vector<8x32xf32>
    %20 = arith.negf %19 : vector<8x32xf32>
    %21 = math.exp %20 : vector<8x32xf32>
    %cst_13 = arith.constant 1.000000e+00 : f32
    %22 = vector.broadcast %cst_13 : f32 to vector<8x32xf32>
    %23 = arith.addf %22, %21 : vector<8x32xf32>
    %24 = arith.divf %22, %23 : vector<8x32xf32>
    %25 = vector.extract_strided_slice %9 {offsets = [0, 64], sizes = [8, 32], strides = [1, 1]} : vector<8x128xf32> to vector<8x32xf32>
    %26 = vector.extract_strided_slice %9 {offsets = [0, 96], sizes = [8, 32], strides = [1, 1]} : vector<8x128xf32> to vector<8x32xf32>
    %27 = arith.mulf %24, %26 : vector<8x32xf32>
    %28 = arith.addf %25, %27 : vector<8x32xf32>
    %29 = math.tanh %28 : vector<8x32xf32>
    %30 = arith.subf %29, %0 : vector<8x32xf32>
    %31 = arith.mulf %18, %30 : vector<8x32xf32>
    %32 = arith.addf %0, %31 : vector<8x32xf32>
    %c0_14 = arith.constant 0 : index
    %c0_15 = arith.constant 0 : index
    %33 = vector.load %arg6[%c0_14, %c0_15] : memref<8x32xf32, #tpu.memory_space<vmem>>, vector<8x32xf32>
    tpu.vector_store %arg6[%c0_14, %c0_15], %32 {strides = array<i32>} : memref<8x32xf32, #tpu.memory_space<vmem>>, vector<8x32xf32>,
    return
  }
}

</mosaic_0001>

<bundles_post_ra>
// kernel: tpu_custom_call.1
= control target key start
LH: loop header
LB: loop body
LE: loop exit
PB: predicated region body
PF: predicated region fallthrough
CT: control target
= control target key end

     0   :  { %11 = vsyncpa [#allocation3], 0  ;;  %s541_s0 = inlined_call_operand.hbm [shape: f32[8,16], index: 0, kind: input, shape index: {}]   ;;  %s542_s1 = inlined_call_operand.hbm [shape: f32[8,32], index: 1, kind: input, shape index: {}]   ;;  %s543_s2 = inlined_call_operand.vmem [shape: f32[8,1], index: 2, kind: input, shape index: {}]   ;;  %s544_s3 = inlined_call_operand.vmem [shape: f32[16,128], index: 3, kind: input, shape index: {}]   ;;  %s545_s4 = inlined_call_operand.hbm [shape: f32[32,128], index: 4, kind: input, shape index: {}]   ;;  %s546_s5 = inlined_call_operand.vmem [shape: f32[1,128], index: 5, kind: input, shape index: {}]   ;;  %s547_s6 = inlined_call_operand.hbm [shape: f32[8,32], index: 6, kind: output, shape index: {}]  }
   0x1   :  { %12 = vsyncpa [#allocation6], 0 }
   0x2   :  { %13 = vsyncpa [#allocation4], 0  ;;  %s429_s21 = smov [#allocation5]   ;;  %s430_s23 = smov [#allocation2]  }
   0x3   :  { %s30_s22 = sshll.u32 %s429_s21, 4  ;;  %s20_s24 = sshll.u32 %s430_s23, 4  ;;  %s31_s22 = int_to_ptr.vmem [resolvable:$true] %s30_s22  ;;  %s21_s24 = int_to_ptr.vmem [resolvable:$true] %s20_s24 }
   0x4   :  { %s335_s27 = scalar_lea.hbm %s542_s1, 128 }
   0x5   :  { %p336_p0 = scmp.ne.s32.totalorder %s542_s1, %s335_s27  ;;  %p339_p1 = scmp.lt.u32.totalorder %s335_s27, %s542_s1 }
   0x7   :  { %p341_p2 = pnand %p339_p1, %p336_p0 }
   0x9   :  { %344 = shalt.err (!%p341_p2)
}
   0xa   :  { %s345_s8 = scalar_lea.vmem %s31_s22, 128  ;;  %p350_p4 = scmp.lt.s32.totalorder %s31_s22, %s31_s22 }
   0xb   :  { %p346_p3 = scmp.ne.s32.totalorder %s31_s22, %s345_s8  ;;  %p351_p5 = scmp.lt.s32.totalorder %s345_s8, %s345_s8 }
   0xd   :  { %p352_p6 = por %p351_p5, %p350_p4 }
   0xf   :  { %p353_p7 = pnand %p352_p6, %p346_p3 }
  0x11   :  { %356 = shalt.err (!%p353_p7)
}
  0x12   :  { %33 = dma.hbm_to_vmem [thread:$0]  %s542_s1, 128, %s31_s22, [#allocation6]  }
  0x13   :  { %s357_s13 = scalar_lea.hbm %s541_s0, 128 }
  0x14   :  { %p358_p8 = scmp.ne.s32.totalorder %s541_s0, %s357_s13  ;;  %p361_p9 = scmp.lt.u32.totalorder %s357_s13, %s541_s0 }
  0x16   :  { %p363_p10 = pnand %p361_p9, %p358_p8 }
  0x18   :  { %366 = shalt.err (!%p363_p10)
}
  0x19   :  { %s367_s18 = scalar_lea.vmem %s21_s24, 128  ;;  %p372_p12 = scmp.lt.s32.totalorder %s21_s24, %s21_s24 }
  0x1a   :  { %p368_p11 = scmp.ne.s32.totalorder %s21_s24, %s367_s18  ;;  %p373_p13 = scmp.lt.s32.totalorder %s367_s18, %s367_s18 }
  0x1c   :  { %p374_p0 = por %p373_p13, %p372_p12 }
  0x1e   :  { %p375_p1 = pnand %p374_p0, %p368_p11 }
  0x20   :  { %378 = shalt.err (!%p375_p1)
}
  0x21   :  { %23 = dma.hbm_to_vmem [thread:$0]  %s541_s0, 128, %s21_s24, [#allocation3]  }
  0x22   :  { %s431_s20 = smov [#allocation7]   ;;  %s379_s25 = scalar_lea.hbm %s545_s4, 512 }
  0x23   :  { %s43_s21 = sshll.u32 %s431_s20, 4  ;;  %p380_p2 = scmp.ne.s32.totalorder %s545_s4, %s379_s25  ;;  %s44_s21 = int_to_ptr.vmem [resolvable:$true] %s43_s21 }
  0x24   :  { %p383_p3 = scmp.lt.u32.totalorder %s379_s25, %s545_s4 }
  0x26   :  { %p385_p4 = pnand %p383_p3, %p380_p2 }
  0x28   :  { %388 = shalt.err (!%p385_p4)
}
  0x29   :  { %s389_s30 = scalar_lea.vmem %s44_s21, 512  ;;  %p394_p6 = scmp.lt.s32.totalorder %s44_s21, %s44_s21 }
  0x2a   :  { %p390_p5 = scmp.ne.s32.totalorder %s44_s21, %s389_s30  ;;  %p395_p7 = scmp.lt.s32.totalorder %s389_s30, %s389_s30 }
  0x2c   :  { %p396_p8 = por %p395_p7, %p394_p6 }
  0x2e   :  { %p397_p9 = pnand %p396_p8, %p390_p5 }
  0x30   :  { %400 = shalt.err (!%p397_p9)
}
  0x31   :  { %s432_s0 = smov 128   ;;  %s433_s24 = smov 8  }
  0x32   :  { %49 = dma.hbm_to_vmem [thread:$0]  %s545_s4, 512, %s44_s21, [#allocation6], %s432_s0, %s432_s0, %s433_s24  }
  0x33   :  { %423 = dma.done.wait [#allocation3], 128  }
  0x34   :  { %424 = vsyncadd [#allocation3], 4294967168 }
  0x35   :  { %425 = dma.done.wait [#allocation6], 640  }
  0x36   :  { %426 = vsyncadd [#allocation6], 4294966656  ;;  %v434_v0 = vmov 0.0|0.0   ;;  %vm435_vm0 = vmmov 0   ;;  %v436_v1 = vmov 0.0   ;;  %v437_v2 = vmov 0  }
  0x37   :  { %306 = vmatprep.subr.bf16.mxu0 %v434_v0  ;;  %312 = vmatprep.subr.bf16.mxu1 %v434_v0  ;;  %v65_v3 = vld [vmem:[#allocation7] sm:$0xff]  ;;  %v66_v4 = vld [vmem:[#allocation7 + $0x8] sm:$0xff]  ;;  %v63_v5 = vld [vmem:[%s544_s3] sm:$0xff]  ;;  %s438_s12 = smov 64   ;;  %vm143_vm1 = vcmask 130048   ;;  %vm69_vm2 = vcmask 261120  }
  0x38   :  { %303 = vmatprep.mubr.msk.f32.mxu1 %vm435_vm0, %v436_v1  ;;  %296 = vmatprep.mubr.msk.f32.mxu0 %vm435_vm0, %v436_v1  ;;  %v307_v6 = vpack.c.bf16 %v66_v4, %v65_v3  ;;  %v64_v7 = vld [vmem:[%s544_s3 + $0x8] sm:$0xff]  ;;  %v67_v8 = vld [vmem:[#allocation7 + $0x10] sm:$0xff] }
  0x39   :  { %327 = vset.pattern.permute.xlu1 %v437_v2  ;;  %328 = vset.pattern.permute.xlu0 %v437_v2  ;;  %v68_v9 = vld [vmem:[#allocation7 + $0x18] sm:$0xff]  ;;  %v313_v10 = vpack.c.bf16 %v64_v7, %v63_v5  ;;  %v62_v13 = vld [vmem:[#allocation2] sm:$0xff] }
  0x3a   :  { %v61_v11 = vld [vmem:[#allocation5] sm:$0xff]  ;;  %308 = vmatpush3.bf16.msra.mxu0 %v307_v6  ;;  %v310_v12 = vpack.c.bf16 %v68_v9, %v67_v8  ;;  %v225_v14 = vld [vmem:[%s543_s2] sm:$0xff]  ;;  %s439_s2 = smov 32  }
  0x3b   :  { %249 = vrot.lane.b32.xlu1 %v61_v11, %s438_s12  ;;  %309 = vmatprep.subr.bf16.mxu0 %v434_v0  ;;  %v278_v18 = vld [vmem:[%s546_s5] ss:$0 sm:$0xff]  ;;  %s440_s5 = smov [#allocation8]  }
  0x3c   :  { %314 = vmatpush3.bf16.msra.mxu1 %v313_v10  ;;  %s266_s16 = sshll.u32 %s440_s5, 4  ;;  %s267_s16 = int_to_ptr.vmem [resolvable:$true] %s266_s16 }
  0x3d   :  { %s401_s17 = scalar_lea.vmem %s267_s16, 128  ;;  %p406_p11 = scmp.lt.s32.totalorder %s267_s16, %s267_s16 }
  0x3e   :  { %311 = vmatpush3.bf16.msra.mxu0 %v310_v12  ;;  %p402_p10 = scmp.ne.s32.totalorder %s267_s16, %s401_s17  ;;  %p407_p12 = scmp.lt.s32.totalorder %s401_s17, %s401_s17 }
  0x3f   :  { %304 = vmatmul.mubr.msk.f32.vlgmr.msra.gmra.mrb[0].mxu1 %vm143_vm1, %v62_v13  ;;  %234 = vperm.xlu1 %327, %v225_v14  }
  0x40   :  { %p408_p13 = por %p407_p12, %p406_p11 }
  0x41   :  { %297 = vmatmul.mubr.msk.f32.vlgmr.msra.gmra.mrb[0].mxu0 %vm69_vm2, %v61_v11 }
  0x42   :  { %p409_p0 = pnand %p408_p13, %p402_p10 }
  0xad   :  { %v250_v31 = vpop.permute.xlu1 %249 }
  0xbe   :  { %v235_v33 = vpop.permute.xlu1 %234 }
 0x112   :  { %v213_v15 = vpop.f32.mrb[0].mxu1 }
 0x113   :  { %v305_v16 = vpop.f32.mrb[1].mxu1 }
 0x114   :  { %v139_v17 = vpop.f32.mrb[0].mxu0 }
 0x115   :  { %v214_v19 = vadd.f32 %v213_v15, %v139_v17  ;;  %v298_v20 = vpop.f32.mrb[1].mxu0 }
 0x117   :  { %v224_v21 = vadd.f32 %v278_v18, %v214_v19 }
 0x119   :  { %239 = vrot.lane.b32.xlu0 %v224_v21, %s438_s12  ;;  %v279_v22 = vmul.f32 -1.442695, %v224_v21 }
 0x11b   :  { %329 = vpow2.f32 %v279_v22 }
 0x125   :  { %v330_v23 = vpop.eup %329 }
 0x126   :  { %v229_v24 = vadd.f32 1.0, %v330_v23 }
 0x128   :  { %331 = vrcp.f32 %v229_v24 }
 0x132   :  { %v332_v25 = vpop.eup %331 }
 0x133   :  { %v237_v34 = vmul.f32 %v332_v25, %v235_v33 }
 0x18b   :  { %v240_v26 = vpop.permute.xlu0 %239 }
 0x18c   :  { %v242_v27 = vmul.f32 %v332_v25, %v240_v26 }
 0x18e   :  { %244 = vrot.lane.b32.xlu0 %v242_v27, %s439_s2 }
 0x200   :  { %v245_v28 = vpop.permute.xlu0 %244 }
 0x201   :  { %v247_v29 = vadd.f32 %v245_v28, %v224_v21 }
 0x203   :  { %333 = vtanh.f32 %v247_v29 }
 0x20d   :  { %v334_v30 = vpop.eup %333 }
 0x20e   :  { %v252_v32 = vsub.f32 %v334_v30, %v250_v31 }
 0x210   :  { %254 = vrot.lane.b32.xlu0 %v252_v32, %s438_s12 }
 0x282   :  { %v255_v35 = vpop.permute.xlu0 %254 }
 0x283   :  { %v257_v36 = vmul.f32 %v255_v35, %v237_v34 }
 0x285   :  { %v258_v37 = vadd.f32 %v257_v36, %v61_v11 }
 0x287   :  { %259 = vst.msk [vmem:[#allocation8] sm:$0xff] %vm69_vm2, %v258_v37 }
 0x288   :  { %412 = shalt.err (!%p409_p0)
}
 0x289   :  { %s413_s19 = scalar_lea.hbm %s547_s6, 128 }
 0x28a   :  { %p414_p1 = scmp.ne.s32.totalorder %s547_s6, %s413_s19  ;;  %p417_p2 = scmp.lt.u32.totalorder %s413_s19, %s547_s6 }
 0x28c   :  { %p419_p3 = pnand %p417_p2, %p414_p1 }
 0x28e   :  { %422 = shalt.err (!%p419_p3)
}
 0x28f   :  { %269 = dma.vmem_to_hbm [thread:$0]  %s267_s16, 128, %s547_s6, [#allocation4]  }
 0x290   :  { %427 = dma.done.wait [#allocation4], 128  }
 0x291   :  { %428 = vsyncadd [#allocation4], 4294967168 }
 0x292   :  { %273 = vsyncpa [#allocation3], 1 }
 0x293   :  { %274 = vsyncpa [#allocation6], 1 }
 0x294   :  { %275 = vsyncpa [#allocation4], 1 }

</bundles_post_ra>
